<compile_context>
chip_gen: v7x
topology: tpu7x:2x2x1
jax: 0.10.0
libtpu: 0.0.40
codegen_flags: <defaults>
</compile_context>

<pallas_src>
import functools

import jax
import jax.numpy as jnp
from jax import lax
from jax.experimental import pallas as pl
from jax.experimental.pallas import tpu as pltpu


def _cdiv(a, b):
    return -(-a // b)


def _round_up(a, b):
    return _cdiv(a, b) * b


# Contract the last (feature) dims of both operands -> A @ B^T on the MXU.
_DN_FEATURE = (((1,), (1,)), ((), ()))
# Ordinary matmul (ones @ X) -> column sums on the MXU.
_DN_ROWSUM = (((1,), (0,)), ((), ()))

_BIG = 1e30          # sentinel distance for padded rows/columns -> exp == 0
_BW_FLOOR = 1e-12    # guard against all-coincident points (bw == 0)


def _tpu_env():
    """(vmem_capacity_bytes, num_cores, use_bf16_exp) for the local device."""
    kind = ""
    try:
        kind = jax.devices()[0].device_kind.lower()
    except Exception:
        pass
    try:
        vmem_cap = int(pltpu.get_tpu_info().vmem_capacity_bytes)
    except Exception:
        vmem_cap = 64 * 1024 * 1024
    is_v7 = ("v7" in kind) or ("7x" in kind)
    use_bf16_exp = is_v7 or ("v6" in kind)   # v5e and older: no bf16 EUP
    num_cores = 2 if is_v7 else 1
    return vmem_cap, num_cores, use_bf16_exp


def _sublane_multiple(dtype):
    return {4: 8, 2: 16, 1: 32}.get(jnp.dtype(dtype).itemsize, 8)


# ----------------------------------------------------------------------------
# RBF-MMD kernel (grid = (num_cores [parallel], steps_per_core [arbitrary])).
# ----------------------------------------------------------------------------
def _mmd_rbf_kernel(src_ref, tgt_ref, out_ref,
                    colsq_s_ref, colsq_t_ref, nib_ref, *,
                    n_src, n_tgt, tm_s, tm_t, steps_per_core, m_sub,
                    kernel_mul, kernel_num, use_bf16_exp):
    core = pl.program_id(0)
    s_local = pl.program_id(1)
    n_total = n_src + n_tgt

    @pl.when(s_local == 0)
    def _init():
        # One domain at a time to bound the transient f32 working set.
        ones_d = jnp.ones((1, src_ref.shape[1]), jnp.float32)

        src_f = src_ref[...].astype(jnp.float32)
        csq_s = lax.dot_general(ones_d, src_f * src_f, _DN_FEATURE,
                                preferred_element_type=jnp.float32)     # (1, rows_s)
        ones_rs = jnp.ones((1, src_f.shape[0]), jnp.float32)
        colsum_s = lax.dot_general(ones_rs, src_f, _DN_ROWSUM,
                                   preferred_element_type=jnp.float32)  # (1, d_pad)
        sumsq_s = jnp.sum(csq_s)
        cid_s = lax.broadcasted_iota(jnp.int32, csq_s.shape, 1)
        colsq_s_ref[...] = jnp.where(cid_s < n_src, csq_s, _BIG)

        tgt_f = tgt_ref[...].astype(jnp.float32)
        csq_t = lax.dot_general(ones_d, tgt_f * tgt_f, _DN_FEATURE,
                                preferred_element_type=jnp.float32)     # (1, rows_t)
        ones_rt = jnp.ones((1, tgt_f.shape[0]), jnp.float32)
        colsum_t = lax.dot_general(ones_rt, tgt_f, _DN_ROWSUM,
                                   preferred_element_type=jnp.float32)
        sumsq_t = jnp.sum(csq_t)
        cid_t = lax.broadcasted_iota(jnp.int32, csq_t.shape, 1)
        colsq_t_ref[...] = jnp.where(cid_t < n_tgt, csq_t, _BIG)

        # Analytic sum of all pairwise squared distances over the real points
        # (padding rows are exact zeros): 2*N*sum||x||^2 - 2*||sum x||^2.
        colsum = colsum_s + colsum_t
        sum_l2 = jnp.maximum(
            2.0 * float(n_total) * (sumsq_s + sumsq_t)
            - 2.0 * jnp.sum(colsum * colsum), 0.0)
        bw = sum_l2 / float(n_total * n_total - n_total)
        bw = bw * (1.0 / float(kernel_mul ** (kernel_num // 2)))
        bw = jnp.maximum(bw, _BW_FLOOR)
        nib_ref[...] = jnp.zeros((1, 1), jnp.float32) - 1.0 / bw
        out_ref[...] = jnp.zeros_like(out_ref)

    # ---- per-step row tiles, sliced from the resident column blocks --------
    gstep = core * steps_per_core + s_local
    row0_s = pl.multiple_of(gstep * tm_s, m_sub)
    row0_t = pl.multiple_of(gstep * tm_t, m_sub)
    srow = src_ref[pl.ds(row0_s, tm_s), :]        # native dtype into the MXU
    trow = tgt_ref[pl.ds(row0_t, tm_t), :]

    g_ss = lax.dot_general(srow, src_ref[...], _DN_FEATURE,
                           preferred_element_type=jnp.float32)   # (tm_s, rows_s)
    g_st = lax.dot_general(srow, tgt_ref[...], _DN_FEATURE,
                           preferred_element_type=jnp.float32)   # (tm_s, rows_t)
    g_tt = lax.dot_general(trow, tgt_ref[...], _DN_FEATURE,
                           preferred_element_type=jnp.float32)   # (tm_t, rows_t)

    srow_f = srow.astype(jnp.float32)
    trow_f = trow.astype(jnp.float32)
    rsq_s = jnp.sum(srow_f * srow_f, axis=1, keepdims=True)      # (tm_s, 1)
    rsq_t = jnp.sum(trow_f * trow_f, axis=1, keepdims=True)      # (tm_t, 1)

    # Fold row validity into rsq ONCE (BIG -> exp == 0); padded columns were
    # already folded into colsq at init.  No per-bandwidth mask multiplies.
    rid_s = lax.broadcasted_iota(jnp.int32, (tm_s, 1), 0) + gstep * tm_s
    rid_t = lax.broadcasted_iota(jnp.int32, (tm_t, 1), 0) + gstep * tm_t
    rsq_s = jnp.where(rid_s < n_src, rsq_s, _BIG)
    rsq_t = jnp.where(rid_t < n_tgt, rsq_t, _BIG)

    l2_ss = jnp.maximum(rsq_s + colsq_s_ref[...] - 2.0 * g_ss, 0.0)
    l2_st = jnp.maximum(rsq_s + colsq_t_ref[...] - 2.0 * g_st, 0.0)
    l2_tt = jnp.maximum(rsq_t + colsq_t_ref[...] - 2.0 * g_tt, 0.0)

    nib = nib_ref[...]                       # (1, 1) == -1 / bandwidth
    zb_ss = l2_ss * nib
    zb_st = l2_st * nib
    zb_tt = l2_tt * nib

    k_ss = jnp.zeros_like(zb_ss)
    k_st = jnp.zeros_like(zb_st)
    k_tt = jnp.zeros_like(zb_tt)
    for i in range(kernel_num):              # static unroll over bandwidths
        scale = 1.0 / (float(kernel_mul) ** i)
        z_ss = zb_ss if i == 0 else zb_ss * scale
        z_st = zb_st if i == 0 else zb_st * scale
        z_tt = zb_tt if i == 0 else zb_tt * scale
        if use_bf16_exp:
            k_ss = k_ss + jnp.exp(z_ss.astype(jnp.bfloat16)).astype(jnp.float32)
            k_st = k_st + jnp.exp(z_st.astype(jnp.bfloat16)).astype(jnp.float32)
            k_tt = k_tt + jnp.exp(z_tt.astype(jnp.bfloat16)).astype(jnp.float32)
        else:
            k_ss = k_ss + jnp.exp(z_ss)
            k_st = k_st + jnp.exp(z_st)
            k_tt = k_tt + jnp.exp(z_tt)

    # Signed block weights: exactly XX + YY - XY - YX (K is symmetric).
    w_ss = 1.0 / float(n_src * n_src)
    w_tt = 1.0 / float(n_tgt * n_tgt)
    w_st = -2.0 / float(n_src * n_tgt)
    part = (w_ss * jnp.sum(k_ss) + w_tt * jnp.sum(k_tt) + w_st * jnp.sum(k_st))
    out_ref[...] = out_ref[...] + part


def mmd_rbf(source, target, *, kernel_mul=2.0, kernel_num=5):
    n_src, d = source.shape
    n_tgt, d2 = target.shape
    assert d == d2, "source/target feature dims must match"

    vmem_cap, num_cores, use_bf16_exp = _tpu_env()
    vmem_limit = (vmem_cap * 3) // 4

    itemsize = jnp.dtype(source.dtype).itemsize
    m_sub = _sublane_multiple(source.dtype)
    d_pad = _round_up(d, 128)

    # --- VMEM budget: resident columns + init spike + per-step f32 slabs ----
    cs_e = _round_up(n_src, m_sub)
    ct_e = _round_up(n_tgt, m_sub)
    resident = (cs_e + ct_e) * d_pad * itemsize            # single-buffered
    init_spike = 2 * max(cs_e, ct_e) * d_pad * 4           # f32 cast + square
    scratch_b = 4 * (_round_up(cs_e, 128) + _round_up(ct_e, 128) + 128)
    avail = max(vmem_limit - resident - init_spike - scratch_b, 1 << 20)

    live = 4                                               # live f32 slab copies
    per_src_row = 4 * live * (cs_e + ct_e)
    per_tgt_row = 4 * live * ct_e

    num_steps = 1
    while True:
        tm_s = _round_up(_cdiv(n_src, num_steps), m_sub)
        tm_t = _round_up(_cdiv(n_tgt, num_steps), m_sub)
        if tm_s * per_src_row + tm_t * per_tgt_row <= avail:
            break
        if tm_s <= m_sub and tm_t <= m_sub:
            break
        num_steps += 1

    steps_per_core = _cdiv(num_steps, num_cores)
    total_steps = steps_per_core * num_cores
    rows_s = total_steps * tm_s
    rows_t = total_steps * tm_t

    # --- wrapper prep: center (translation-invariant), pad rows & D ---------
    f32 = jnp.float32
    center = (jnp.sum(source.astype(f32), axis=0)
              + jnp.sum(target.astype(f32), axis=0)) / float(n_src + n_tgt)
    src_c = (source.astype(f32) - center).astype(source.dtype)
    tgt_c = (target.astype(f32) - center).astype(target.dtype)
    src_p = jnp.pad(src_c, ((0, rows_s - n_src), (0, d_pad - d)))
    tgt_p = jnp.pad(tgt_c, ((0, rows_t - n_tgt), (0, d_pad - d)))

    kernel = functools.partial(
        _mmd_rbf_kernel, n_src=n_src, n_tgt=n_tgt, tm_s=tm_s, tm_t=tm_t,
        steps_per_core=steps_per_core, m_sub=m_sub,
        kernel_mul=float(kernel_mul), kernel_num=int(kernel_num),
        use_bf16_exp=bool(use_bf16_exp))

    out = pl.pallas_call(
        kernel,
        out_shape=jax.ShapeDtypeStruct((1, 128 * num_cores), jnp.float32),
        grid=(num_cores, steps_per_core),
        in_specs=[
            # Resident column matrices; block index never changes -> single
            # buffer is enough, row tiles are sliced from them in-kernel.
            pl.BlockSpec((rows_s, d_pad), lambda c, s: (0, 0),
                         pipeline_mode=pl.Buffered(1)),
            pl.BlockSpec((rows_t, d_pad), lambda c, s: (0, 0),
                         pipeline_mode=pl.Buffered(1)),
        ],
        out_specs=pl.BlockSpec((1, 128), lambda c, s: (0, c)),
        scratch_shapes=[
            pltpu.VMEM((1, rows_s), jnp.float32),   # column ||x_j||^2 (src, masked)
            pltpu.VMEM((1, rows_t), jnp.float32),   # column ||x_j||^2 (tgt, masked)
            pltpu.VMEM((1, 1), jnp.float32),        # -1 / bandwidth
        ],
        compiler_params=pltpu.CompilerParams(
            dimension_semantics=("parallel", "arbitrary"),
            vmem_limit_bytes=int(vmem_limit),
        ),
    )(src_p, tgt_p)

    # One partial per core in lane 0 of its (1, 128) block.
    return jnp.sum(out.reshape(num_cores, 128)[:, 0])


# ----------------------------------------------------------------------------
# Linear-MMD kernel:  loss = || mean(X, 0) - mean(Y, 0) ||^2   (row-tiled)
# ----------------------------------------------------------------------------
def _mmd_linear_kernel(src_ref, tgt_ref, out_ref, cs_ref, ct_ref, *,
                       n_src, n_tgt):
    step = pl.program_id(0)

    @pl.when(step == 0)
    def _init():
        cs_ref[...] = jnp.zeros_like(cs_ref)
        ct_ref[...] = jnp.zeros_like(ct_ref)

    # Padded rows are exact zeros -> no masking needed; axis-0 sums go through
    # the (otherwise idle) MXU as a ones-matvec instead of an XLU reduce.
    srow = src_ref[...]
    trow = tgt_ref[...]
    ones_s = jnp.ones((1, srow.shape[0]), srow.dtype)
    ones_t = jnp.ones((1, trow.shape[0]), trow.dtype)
    cs_ref[...] = cs_ref[...] + lax.dot_general(
        ones_s, srow, _DN_ROWSUM, preferred_element_type=jnp.float32)
    ct_ref[...] = ct_ref[...] + lax.dot_general(
        ones_t, trow, _DN_ROWSUM, preferred_element_type=jnp.float32)

    @pl.when(step == pl.num_programs(0) - 1)
    def _finalize():
        delta = (cs_ref[...] * (1.0 / float(n_src))
                 - ct_ref[...] * (1.0 / float(n_tgt)))
        out_ref[...] = jnp.zeros_like(out_ref) + jnp.sum(delta * delta)


def mmd_linear(source, target):
    n_src, d = source.shape
    n_tgt, d2 = target.shape
    assert d == d2, "source/target feature dims must match"

    vmem_cap, _, _ = _tpu_env()
    vmem_limit = (vmem_cap * 3) // 4
    budget = vmem_cap // 4

    itemsize = jnp.dtype(source.dtype).itemsize
    m_sub = _sublane_multiple(source.dtype)
    d_pad = _round_up(d, 128)

    num_steps = 1
    while True:
        tm_s = _round_up(_cdiv(n_src, num_steps), m_sub)
        tm_t = _round_up(_cdiv(n_tgt, num_steps), m_sub)
        if 2 * (tm_s + tm_t) * d_pad * itemsize <= budget:
            break
        if tm_s <= m_sub and tm_t <= m_sub:
            break
        num_steps += 1

    rows_s = num_steps * tm_s
    rows_t = num_steps * tm_t
    src_p = jnp.pad(source, ((0, rows_s - n_src), (0, d_pad - d)))
    tgt_p = jnp.pad(target, ((0, rows_t - n_tgt), (0, d_pad - d)))

    kernel = functools.partial(_mmd_linear_kernel, n_src=n_src, n_tgt=n_tgt)
    out = pl.pallas_call(
        kernel,
        out_shape=jax.ShapeDtypeStruct((1, 128), jnp.float32),
        grid=(num_steps,),
        in_specs=[
            pl.BlockSpec((tm_s, d_pad), lambda i: (i, 0)),
            pl.BlockSpec((tm_t, d_pad), lambda i: (i, 0)),
        ],
        out_specs=pl.BlockSpec((1, 128), lambda i: (0, 0)),
        scratch_shapes=[
            pltpu.VMEM((1, d_pad), jnp.float32),   # running column sum (src)
            pltpu.VMEM((1, d_pad), jnp.float32),   # running column sum (tgt)
        ],
        compiler_params=pltpu.CompilerParams(
            dimension_semantics=("arbitrary",),
            vmem_limit_bytes=int(vmem_limit),
        ),
    )(src_p, tgt_p)
    return out[0, 0]


# ----------------------------------------------------------------------------
# Module-equivalent wrapper
# ----------------------------------------------------------------------------
class MMDLoss:
    """JAX/Pallas equivalent of the PyTorch MMDLoss module (forward pass)."""

    def __init__(self, kernel_type="rbf", kernel_mul=2.0, kernel_num=5,
                 fix_sigma=None, **kwargs):
        self.kernel_type = kernel_type
        self.kernel_num = int(kernel_num)
        self.kernel_mul = float(kernel_mul)
        self.fix_sigma = None   # the PyTorch __init__ always stores None

    def __call__(self, source, target):
        if self.kernel_type == "linear":
            return mmd_linear(source, target)
        elif self.kernel_type == "rbf":
            return mmd_rbf(source, target, kernel_mul=self.kernel_mul,
                           kernel_num=self.kernel_num)
        else:
            raise ValueError(f"unknown kernel_type: {self.kernel_type}")


# ----------------------------------------------------------------------------
# Pure-JAX references (mirror the PyTorch code) for correctness checking.
# ----------------------------------------------------------------------------
def _rbf_reference(source, target, kernel_mul=2.0, kernel_num=5):
    src = source.astype(jnp.float32)
    tgt = target.astype(jnp.float32)
    n_s, n_t = src.shape[0], tgt.shape[0]
    total = jnp.concatenate([src, tgt], axis=0)
    n = n_s + n_t
    diff = total[:, None, :] - total[None, :, :]
    l2 = jnp.sum(diff * diff, axis=-1)
    bw = jnp.sum(l2) / (n * n - n)
    bw = bw / (kernel_mul ** (kernel_num // 2))
    k = sum(jnp.exp(-l2 / (bw * kernel_mul ** i)) for i in range(kernel_num))
    xx = jnp.mean(k[:n_s, :n_s])
    yy = jnp.mean(k[n_s:, n_s:])
    xy = jnp.mean(k[:n_s, n_s:])
    yx = jnp.mean(k[n_s:, :n_s])
    return xx + yy - xy - yx


def _linear_reference(source, target):
    delta = (jnp.mean(source.astype(jnp.float32), axis=0)
             - jnp.mean(target.astype(jnp.float32), axis=0))
    return jnp.sum(delta * delta)


if __name__ == "__main__":
    key = jax.random.PRNGKey(0)
    k1, k2, k3 = jax.random.split(key, 3)

    # Small shapes consistent with the module: (batch, feature_dim).
    source = jax.random.normal(k1, (4, 32), dtype=jnp.float32)
    target = jax.random.normal(k2, (4, 32), dtype=jnp.float32) + 0.5
    target_uneq = jax.random.normal(k3, (6, 32), dtype=jnp.float32) + 0.25

    mmd_rbf_mod = MMDLoss(kernel_type="rbf")
    mmd_lin_mod = MMDLoss(kernel_type="linear")

    loss_rbf = jax.block_until_ready(mmd_rbf_mod(source, target))
    loss_rbf_uneq = jax.block_until_ready(mmd_rbf_mod(source, target_uneq))
    loss_lin = jax.block_until_ready(mmd_lin_mod(source, target))

    ref_rbf = _rbf_reference(source, target)
    ref_rbf_uneq = _rbf_reference(source, target_uneq)
    ref_lin = _linear_reference(source, target)

    _, _, _bf16_exp = _tpu_env()
    rbf_rtol, rbf_atol = (5e-2, 1e-3) if _bf16_exp else (2e-3, 1e-5)

    assert loss_rbf.shape == () and bool(jnp.isfinite(loss_rbf))
    assert bool(jnp.allclose(loss_rbf, ref_rbf, rtol=rbf_rtol, atol=rbf_atol)), \
        (loss_rbf, ref_rbf)
    assert bool(jnp.allclose(loss_rbf_uneq, ref_rbf_uneq, rtol=rbf_rtol,
                             atol=rbf_atol)), (loss_rbf_uneq, ref_rbf_uneq)
    assert bool(jnp.allclose(loss_lin, ref_lin, rtol=1e-4, atol=1e-6)), \
        (loss_lin, ref_lin)

    print("KERNEL_OK")
</pallas_src>

<mosaic_0001>
module attributes {stable_mosaic.version = 11 : i64} {
  func.func @_mmd_rbf_kernel(%arg0: i32, %arg1: i32, %arg2: memref<8x128xf32, #tpu.memory_space<vmem>>, %arg3: memref<8x128xf32, #tpu.memory_space<vmem>>, %arg4: memref<1x128xf32, #tpu.memory_space<vmem>>, %arg5: memref<1x8xf32, #tpu.memory_space<vmem>>, %arg6: memref<1x8xf32, #tpu.memory_space<vmem>>, %arg7: memref<1x1xf32, #tpu.memory_space<vmem>>) attributes {dimension_semantics = [#tpu.dimension_semantics<parallel>, #tpu.dimension_semantics<arbitrary>], iteration_bounds = array<i64: 1, 1>, scalar_prefetch = 0 : i64, scratch_operands = 3 : i64, tpu.core_type = #tpu.core_type<tc>, window_params = [{pipeline_mode = #tpu.pipeline_mode<synchronous>, transform_indices = @transform_0, window_bounds = array<i64: 8, 128>}, {pipeline_mode = #tpu.pipeline_mode<synchronous>, transform_indices = @transform_1, window_bounds = array<i64: 8, 128>}, {transform_indices = @transform_2, window_bounds = array<i64: 1, 128>}]} {
    %c0_i32 = arith.constant 0 : i32
    %0 = arith.cmpi eq, %arg1, %c0_i32 : i32
    %1 = arith.extui %0 : i1 to i32
    %c0_i32_0 = arith.constant 0 : i32
    %2 = arith.cmpi ne, %1, %c0_i32_0 : i32
    scf.if %2 {
      %cst_57 = arith.constant 1.000000e+00 : f32
      %153 = vector.broadcast %cst_57 : f32 to vector<1x128xf32>
      %c0_58 = arith.constant 0 : index
      %c0_59 = arith.constant 0 : index
      %154 = vector.load %arg2[%c0_58, %c0_59] : memref<8x128xf32, #tpu.memory_space<vmem>>, vector<8x128xf32>
      %155 = arith.mulf %154, %154 : vector<8x128xf32>
      %cst_60 = arith.constant dense<0.000000e+00> : vector<1x8xf32>
      %156 = tpu.matmul %153, %155, %cst_60 {dimension_numbers = #tpu.dot_dimension_numbers<[1], [1], [0], [0], [0, 0, 1, 0], [], []>} : vector<1x128xf32>, vector<8x128xf32>, vector<1x8xf32> -> vector<1x8xf32>
      %cst_61 = arith.constant 1.000000e+00 : f32
      %157 = vector.broadcast %cst_61 : f32 to vector<1x8xf32>
      %cst_62 = arith.constant dense<0.000000e+00> : vector<1x128xf32>
      %158 = tpu.matmul %157, %154, %cst_62 {dimension_numbers = #tpu.dot_dimension_numbers<[1], [0], [0], [1], [0, 0, 1, 1], [], []>} : vector<1x8xf32>, vector<8x128xf32>, vector<1x128xf32> -> vector<1x128xf32>
      %159 = vector.shape_cast %156 : vector<1x8xf32> to vector<1x1x8xf32>
      %cst_63 = arith.constant dense<0.000000e+00> : vector<1xf32>
      %160 = vector.multi_reduction <add>, %159, %cst_63 [1, 2] : vector<1x1x8xf32> to vector<1xf32>
      %161 = vector.shape_cast %160 : vector<1xf32> to vector<1x1x1xf32>
      %162 = vector.extract %161[0, 0, 0] : f32 from vector<1x1x1xf32>
      %163 = tpu.iota {dimensions = array<i32: 1>} : vector<1x8xi32>
      %c4_i32_64 = arith.constant 4 : i32
      %164 = vector.broadcast %c4_i32_64 : i32 to vector<1x8xi32>
      %165 = arith.cmpi slt, %163, %164 : vector<1x8xi32>
      %cst_65 = arith.constant 1.000000e+30 : f32
      %166 = vector.broadcast %cst_65 : f32 to vector<1x8xf32>
      %167 = arith.select %165, %156, %166 : vector<1x8xi1>, vector<1x8xf32>
      %c0_66 = arith.constant 0 : index
      %c0_67 = arith.constant 0 : index
      %168 = vector.load %arg5[%c0_66, %c0_67] : memref<1x8xf32, #tpu.memory_space<vmem>>, vector<1x8xf32>
      tpu.vector_store %arg5[%c0_66, %c0_67], %167 {strides = array<i32>} : memref<1x8xf32, #tpu.memory_space<vmem>>, vector<1x8xf32>,
      %c0_68 = arith.constant 0 : index
      %c0_69 = arith.constant 0 : index
      %169 = vector.load %arg3[%c0_68, %c0_69] : memref<8x128xf32, #tpu.memory_space<vmem>>, vector<8x128xf32>
      %170 = arith.mulf %169, %169 : vector<8x128xf32>
      %cst_70 = arith.constant dense<0.000000e+00> : vector<1x8xf32>
      %171 = tpu.matmul %153, %170, %cst_70 {dimension_numbers = #tpu.dot_dimension_numbers<[1], [1], [0], [0], [0, 0, 1, 0], [], []>} : vector<1x128xf32>, vector<8x128xf32>, vector<1x8xf32> -> vector<1x8xf32>
      %cst_71 = arith.constant 1.000000e+00 : f32
      %172 = vector.broadcast %cst_71 : f32 to vector<1x8xf32>
      %cst_72 = arith.constant dense<0.000000e+00> : vector<1x128xf32>
      %173 = tpu.matmul %172, %169, %cst_72 {dimension_numbers = #tpu.dot_dimension_numbers<[1], [0], [0], [1], [0, 0, 1, 1], [], []>} : vector<1x8xf32>, vector<8x128xf32>, vector<1x128xf32> -> vector<1x128xf32>
      %174 = vector.shape_cast %171 : vector<1x8xf32> to vector<1x1x8xf32>
      %cst_73 = arith.constant dense<0.000000e+00> : vector<1xf32>
      %175 = vector.multi_reduction <add>, %174, %cst_73 [1, 2] : vector<1x1x8xf32> to vector<1xf32>
      %176 = vector.shape_cast %175 : vector<1xf32> to vector<1x1x1xf32>
      %177 = vector.extract %176[0, 0, 0] : f32 from vector<1x1x1xf32>
      %178 = tpu.iota {dimensions = array<i32: 1>} : vector<1x8xi32>
      %c4_i32_74 = arith.constant 4 : i32
      %179 = vector.broadcast %c4_i32_74 : i32 to vector<1x8xi32>
      %180 = arith.cmpi slt, %178, %179 : vector<1x8xi32>
      %cst_75 = arith.constant 1.000000e+30 : f32
      %181 = vector.broadcast %cst_75 : f32 to vector<1x8xf32>
      %182 = arith.select %180, %171, %181 : vector<1x8xi1>, vector<1x8xf32>
      %c0_76 = arith.constant 0 : index
      %c0_77 = arith.constant 0 : index
      %183 = vector.load %arg6[%c0_76, %c0_77] : memref<1x8xf32, #tpu.memory_space<vmem>>, vector<1x8xf32>
      tpu.vector_store %arg6[%c0_76, %c0_77], %182 {strides = array<i32>} : memref<1x8xf32, #tpu.memory_space<vmem>>, vector<1x8xf32>,
      %184 = arith.addf %158, %173 : vector<1x128xf32>
      %185 = arith.addf %162, %177 : f32
      %cst_78 = arith.constant 1.600000e+01 : f32
      %186 = arith.mulf %cst_78, %185 : f32
      %187 = arith.mulf %184, %184 : vector<1x128xf32>
      %188 = vector.shape_cast %187 : vector<1x128xf32> to vector<1x1x128xf32>
      %cst_79 = arith.constant dense<0.000000e+00> : vector<1xf32>
      %189 = vector.multi_reduction <add>, %188, %cst_79 [1, 2] : vector<1x1x128xf32> to vector<1xf32>
      %190 = vector.shape_cast %189 : vector<1xf32> to vector<1x1x1xf32>
      %191 = vector.extract %190[0, 0, 0] : f32 from vector<1x1x1xf32>
      %cst_80 = arith.constant 2.000000e+00 : f32
      %192 = arith.mulf %cst_80, %191 : f32
      %193 = arith.subf %186, %192 : f32
      %cst_81 = arith.constant 0.000000e+00 : f32
      %194 = arith.maximumf %193, %cst_81 : f32
      %cst_82 = arith.constant 5.600000e+01 : f32
      %195 = arith.divf %194, %cst_82 : f32
      %cst_83 = arith.constant 2.500000e-01 : f32
      %196 = arith.mulf %195, %cst_83 : f32
      %cst_84 = arith.constant 9.99999996E-13 : f32
      %197 = arith.maximumf %196, %cst_84 : f32
      %cst_85 = arith.constant 0.000000e+00 : f32
      %198 = vector.broadcast %cst_85 : f32 to vector<1x1xf32>
      %cst_86 = arith.constant 1.000000e+00 : f32
      %199 = arith.divf %cst_86, %197 : f32
      %200 = vector.broadcast %199 : f32 to vector<1x1xf32>
      %201 = arith.subf %198, %200 : vector<1x1xf32>
      %c0_87 = arith.constant 0 : index
      %c0_88 = arith.constant 0 : index
      %202 = vector.load %arg7[%c0_87, %c0_88] : memref<1x1xf32, #tpu.memory_space<vmem>>, vector<1x1xf32>
      tpu.vector_store %arg7[%c0_87, %c0_88], %201 {strides = array<i32>} : memref<1x1xf32, #tpu.memory_space<vmem>>, vector<1x1xf32>,
      %cst_89 = arith.constant 0.000000e+00 : f32
      %203 = vector.broadcast %cst_89 : f32 to vector<1x128xf32>
      %c0_90 = arith.constant 0 : index
      %c0_91 = arith.constant 0 : index
      %204 = vector.load %arg4[%c0_90, %c0_91] : memref<1x128xf32, #tpu.memory_space<vmem>>, vector<1x128xf32>
      tpu.vector_store %arg4[%c0_90, %c0_91], %203 {strides = array<i32>} : memref<1x128xf32, #tpu.memory_space<vmem>>, vector<1x128xf32>,
    } else {
    }
    %c1_i32 = arith.constant 1 : i32
    %3 = arith.muli %arg0, %c1_i32 : i32
    %4 = arith.addi %3, %arg1 : i32
    %c8_i32 = arith.constant 8 : i32
    %5 = arith.muli %4, %c8_i32 : i32
    %6 = tpu.assume_multiple %5, 8 : i32
    %c8_i32_1 = arith.constant 8 : i32
    %7 = arith.muli %4, %c8_i32_1 : i32
    %8 = tpu.assume_multiple %7, 8 : i32
    %9 = arith.index_cast %6 : i32 to index
    %c0 = arith.constant 0 : index
    %10 = vector.load %arg2[%9, %c0] : memref<8x128xf32, #tpu.memory_space<vmem>>, vector<8x128xf32>
    %11 = arith.index_cast %8 : i32 to index
    %c0_2 = arith.constant 0 : index
    %12 = vector.load %arg3[%11, %c0_2] : memref<8x128xf32, #tpu.memory_space<vmem>>, vector<8x128xf32>
    %c0_3 = arith.constant 0 : index
    %c0_4 = arith.constant 0 : index
    %13 = vector.load %arg2[%c0_3, %c0_4] : memref<8x128xf32, #tpu.memory_space<vmem>>, vector<8x128xf32>
    %cst = arith.constant dense<0.000000e+00> : vector<8x8xf32>
    %14 = tpu.matmul %10, %13, %cst {dimension_numbers = #tpu.dot_dimension_numbers<[1], [1], [0], [0], [0, 0, 1, 0], [], []>} : vector<8x128xf32>, vector<8x128xf32>, vector<8x8xf32> -> vector<8x8xf32>
    %c0_5 = arith.constant 0 : index
    %c0_6 = arith.constant 0 : index
    %15 = vector.load %arg3[%c0_5, %c0_6] : memref<8x128xf32, #tpu.memory_space<vmem>>, vector<8x128xf32>
    %cst_7 = arith.constant dense<0.000000e+00> : vector<8x8xf32>
    %16 = tpu.matmul %10, %15, %cst_7 {dimension_numbers = #tpu.dot_dimension_numbers<[1], [1], [0], [0], [0, 0, 1, 0], [], []>} : vector<8x128xf32>, vector<8x128xf32>, vector<8x8xf32> -> vector<8x8xf32>
    %c0_8 = arith.constant 0 : index
    %c0_9 = arith.constant 0 : index
    %17 = vector.load %arg3[%c0_8, %c0_9] : memref<8x128xf32, #tpu.memory_space<vmem>>, vector<8x128xf32>
    %cst_10 = arith.constant dense<0.000000e+00> : vector<8x8xf32>
    %18 = tpu.matmul %12, %17, %cst_10 {dimension_numbers = #tpu.dot_dimension_numbers<[1], [1], [0], [0], [0, 0, 1, 0], [], []>} : vector<8x128xf32>, vector<8x128xf32>, vector<8x8xf32> -> vector<8x8xf32>
    %19 = arith.mulf %10, %10 : vector<8x128xf32>
    %cst_11 = arith.constant dense<0.000000e+00> : vector<8xf32>
    %20 = vector.multi_reduction <add>, %19, %cst_11 [1] : vector<8x128xf32> to vector<8xf32>
    %21 = vector.shape_cast %20 : vector<8xf32> to vector<8x1xf32>
    %22 = arith.mulf %12, %12 : vector<8x128xf32>
    %cst_12 = arith.constant dense<0.000000e+00> : vector<8xf32>
    %23 = vector.multi_reduction <add>, %22, %cst_12 [1] : vector<8x128xf32> to vector<8xf32>
    %24 = vector.shape_cast %23 : vector<8xf32> to vector<8x1xf32>
    %25 = tpu.iota {dimensions = array<i32: 0>} : vector<8x1xi32>
    %c8_i32_13 = arith.constant 8 : i32
    %26 = arith.muli %4, %c8_i32_13 : i32
    %27 = vector.broadcast %26 : i32 to vector<8x1xi32>
    %28 = arith.addi %25, %27 : vector<8x1xi32>
    %29 = tpu.iota {dimensions = array<i32: 0>} : vector<8x1xi32>
    %c8_i32_14 = arith.constant 8 : i32
    %30 = arith.muli %4, %c8_i32_14 : i32
    %31 = vector.broadcast %30 : i32 to vector<8x1xi32>
    %32 = arith.addi %29, %31 : vector<8x1xi32>
    %c4_i32 = arith.constant 4 : i32
    %33 = vector.broadcast %c4_i32 : i32 to vector<8x1xi32>
    %34 = arith.cmpi slt, %28, %33 : vector<8x1xi32>
    %cst_15 = arith.constant 1.000000e+30 : f32
    %35 = vector.broadcast %cst_15 : f32 to vector<8x1xf32>
    %36 = arith.select %34, %21, %35 : vector<8x1xi1>, vector<8x1xf32>
    %c4_i32_16 = arith.constant 4 : i32
    %37 = vector.broadcast %c4_i32_16 : i32 to vector<8x1xi32>
    %38 = arith.cmpi slt, %32, %37 : vector<8x1xi32>
    %cst_17 = arith.constant 1.000000e+30 : f32
    %39 = vector.broadcast %cst_17 : f32 to vector<8x1xf32>
    %40 = arith.select %38, %24, %39 : vector<8x1xi1>, vector<8x1xf32>
    %c0_18 = arith.constant 0 : index
    %c0_19 = arith.constant 0 : index
    %41 = vector.load %arg5[%c0_18, %c0_19] : memref<1x8xf32, #tpu.memory_space<vmem>>, vector<1x8xf32>
    %42 = vector.broadcast %36 : vector<8x1xf32> to vector<8x8xf32>
    %43 = vector.broadcast %41 : vector<1x8xf32> to vector<8x8xf32>
    %44 = arith.addf %42, %43 : vector<8x8xf32>
    %cst_20 = arith.constant 2.000000e+00 : f32
    %45 = vector.broadcast %cst_20 : f32 to vector<8x8xf32>
    %46 = arith.mulf %45, %14 : vector<8x8xf32>
    %47 = arith.subf %44, %46 : vector<8x8xf32>
    %cst_21 = arith.constant 0.000000e+00 : f32
    %48 = vector.broadcast %cst_21 : f32 to vector<8x8xf32>
    %49 = arith.maximumf %47, %48 : vector<8x8xf32>
    %c0_22 = arith.constant 0 : index
    %c0_23 = arith.constant 0 : index
    %50 = vector.load %arg6[%c0_22, %c0_23] : memref<1x8xf32, #tpu.memory_space<vmem>>, vector<1x8xf32>
    %51 = vector.broadcast %36 : vector<8x1xf32> to vector<8x8xf32>
    %52 = vector.broadcast %50 : vector<1x8xf32> to vector<8x8xf32>
    %53 = arith.addf %51, %52 : vector<8x8xf32>
    %cst_24 = arith.constant 2.000000e+00 : f32
    %54 = vector.broadcast %cst_24 : f32 to vector<8x8xf32>
    %55 = arith.mulf %54, %16 : vector<8x8xf32>
    %56 = arith.subf %53, %55 : vector<8x8xf32>
    %cst_25 = arith.constant 0.000000e+00 : f32
    %57 = vector.broadcast %cst_25 : f32 to vector<8x8xf32>
    %58 = arith.maximumf %56, %57 : vector<8x8xf32>
    %c0_26 = arith.constant 0 : index
    %c0_27 = arith.constant 0 : index
    %59 = vector.load %arg6[%c0_26, %c0_27] : memref<1x8xf32, #tpu.memory_space<vmem>>, vector<1x8xf32>
    %60 = vector.broadcast %40 : vector<8x1xf32> to vector<8x8xf32>
    %61 = vector.broadcast %59 : vector<1x8xf32> to vector<8x8xf32>
    %62 = arith.addf %60, %61 : vector<8x8xf32>
    %cst_28 = arith.constant 2.000000e+00 : f32
    %63 = vector.broadcast %cst_28 : f32 to vector<8x8xf32>
    %64 = arith.mulf %63, %18 : vector<8x8xf32>
    %65 = arith.subf %62, %64 : vector<8x8xf32>
    %cst_29 = arith.constant 0.000000e+00 : f32
    %66 = vector.broadcast %cst_29 : f32 to vector<8x8xf32>
    %67 = arith.maximumf %65, %66 : vector<8x8xf32>
    %c0_30 = arith.constant 0 : index
    %c0_31 = arith.constant 0 : index
    %68 = vector.load %arg7[%c0_30, %c0_31] : memref<1x1xf32, #tpu.memory_space<vmem>>, vector<1x1xf32>
    %69 = vector.broadcast %68 : vector<1x1xf32> to vector<8x8xf32>
    %70 = arith.mulf %49, %69 : vector<8x8xf32>
    %71 = vector.broadcast %68 : vector<1x1xf32> to vector<8x8xf32>
    %72 = arith.mulf %58, %71 : vector<8x8xf32>
    %73 = vector.broadcast %68 : vector<1x1xf32> to vector<8x8xf32>
    %74 = arith.mulf %67, %73 : vector<8x8xf32>
    %cst_32 = arith.constant 0.000000e+00 : f32
    %75 = vector.broadcast %cst_32 : f32 to vector<8x8xf32>
    %cst_33 = arith.constant 0.000000e+00 : f32
    %76 = vector.broadcast %cst_33 : f32 to vector<8x8xf32>
    %cst_34 = arith.constant 0.000000e+00 : f32
    %77 = vector.broadcast %cst_34 : f32 to vector<8x8xf32>
    %78 = math.exp %70 : vector<8x8xf32>
    %79 = arith.addf %75, %78 : vector<8x8xf32>
    %80 = math.exp %72 : vector<8x8xf32>
    %81 = arith.addf %76, %80 : vector<8x8xf32>
    %82 = math.exp %74 : vector<8x8xf32>
    %83 = arith.addf %77, %82 : vector<8x8xf32>
    %cst_35 = arith.constant 5.000000e-01 : f32
    %84 = vector.broadcast %cst_35 : f32 to vector<8x8xf32>
    %85 = arith.mulf %70, %84 : vector<8x8xf32>
    %cst_36 = arith.constant 5.000000e-01 : f32
    %86 = vector.broadcast %cst_36 : f32 to vector<8x8xf32>
    %87 = arith.mulf %72, %86 : vector<8x8xf32>
    %cst_37 = arith.constant 5.000000e-01 : f32
    %88 = vector.broadcast %cst_37 : f32 to vector<8x8xf32>
    %89 = arith.mulf %74, %88 : vector<8x8xf32>
    %90 = math.exp %85 : vector<8x8xf32>
    %91 = arith.addf %79, %90 : vector<8x8xf32>
    %92 = math.exp %87 : vector<8x8xf32>
    %93 = arith.addf %81, %92 : vector<8x8xf32>
    %94 = math.exp %89 : vector<8x8xf32>
    %95 = arith.addf %83, %94 : vector<8x8xf32>
    %cst_38 = arith.constant 2.500000e-01 : f32
    %96 = vector.broadcast %cst_38 : f32 to vector<8x8xf32>
    %97 = arith.mulf %70, %96 : vector<8x8xf32>
    %cst_39 = arith.constant 2.500000e-01 : f32
    %98 = vector.broadcast %cst_39 : f32 to vector<8x8xf32>
    %99 = arith.mulf %72, %98 : vector<8x8xf32>
    %cst_40 = arith.constant 2.500000e-01 : f32
    %100 = vector.broadcast %cst_40 : f32 to vector<8x8xf32>
    %101 = arith.mulf %74, %100 : vector<8x8xf32>
    %102 = math.exp %97 : vector<8x8xf32>
    %103 = arith.addf %91, %102 : vector<8x8xf32>
    %104 = math.exp %99 : vector<8x8xf32>
    %105 = arith.addf %93, %104 : vector<8x8xf32>
    %106 = math.exp %101 : vector<8x8xf32>
    %107 = arith.addf %95, %106 : vector<8x8xf32>
    %cst_41 = arith.constant 1.250000e-01 : f32
    %108 = vector.broadcast %cst_41 : f32 to vector<8x8xf32>
    %109 = arith.mulf %70, %108 : vector<8x8xf32>
    %cst_42 = arith.constant 1.250000e-01 : f32
    %110 = vector.broadcast %cst_42 : f32 to vector<8x8xf32>
    %111 = arith.mulf %72, %110 : vector<8x8xf32>
    %cst_43 = arith.constant 1.250000e-01 : f32
    %112 = vector.broadcast %cst_43 : f32 to vector<8x8xf32>
    %113 = arith.mulf %74, %112 : vector<8x8xf32>
    %114 = math.exp %109 : vector<8x8xf32>
    %115 = arith.addf %103, %114 : vector<8x8xf32>
    %116 = math.exp %111 : vector<8x8xf32>
    %117 = arith.addf %105, %116 : vector<8x8xf32>
    %118 = math.exp %113 : vector<8x8xf32>
    %119 = arith.addf %107, %118 : vector<8x8xf32>
    %cst_44 = arith.constant 6.250000e-02 : f32
    %120 = vector.broadcast %cst_44 : f32 to vector<8x8xf32>
    %121 = arith.mulf %70, %120 : vector<8x8xf32>
    %cst_45 = arith.constant 6.250000e-02 : f32
    %122 = vector.broadcast %cst_45 : f32 to vector<8x8xf32>
    %123 = arith.mulf %72, %122 : vector<8x8xf32>
    %cst_46 = arith.constant 6.250000e-02 : f32
    %124 = vector.broadcast %cst_46 : f32 to vector<8x8xf32>
    %125 = arith.mulf %74, %124 : vector<8x8xf32>
    %126 = math.exp %121 : vector<8x8xf32>
    %127 = arith.addf %115, %126 : vector<8x8xf32>
    %128 = math.exp %123 : vector<8x8xf32>
    %129 = arith.addf %117, %128 : vector<8x8xf32>
    %130 = math.exp %125 : vector<8x8xf32>
    %131 = arith.addf %119, %130 : vector<8x8xf32>
    %132 = vector.shape_cast %127 : vector<8x8xf32> to vector<1x8x8xf32>
    %cst_47 = arith.constant dense<0.000000e+00> : vector<1xf32>
    %133 = vector.multi_reduction <add>, %132, %cst_47 [1, 2] : vector<1x8x8xf32> to vector<1xf32>
    %134 = vector.shape_cast %133 : vector<1xf32> to vector<1x1x1xf32>
    %135 = vector.extract %134[0, 0, 0] : f32 from vector<1x1x1xf32>
    %cst_48 = arith.constant 6.250000e-02 : f32
    %136 = arith.mulf %cst_48, %135 : f32
    %137 = vector.shape_cast %131 : vector<8x8xf32> to vector<1x8x8xf32>
    %cst_49 = arith.constant dense<0.000000e+00> : vector<1xf32>
    %138 = vector.multi_reduction <add>, %137, %cst_49 [1, 2] : vector<1x8x8xf32> to vector<1xf32>
    %139 = vector.shape_cast %138 : vector<1xf32> to vector<1x1x1xf32>
    %140 = vector.extract %139[0, 0, 0] : f32 from vector<1x1x1xf32>
    %cst_50 = arith.constant 6.250000e-02 : f32
    %141 = arith.mulf %cst_50, %140 : f32
    %142 = arith.addf %136, %141 : f32
    %143 = vector.shape_cast %129 : vector<8x8xf32> to vector<1x8x8xf32>
    %cst_51 = arith.constant dense<0.000000e+00> : vector<1xf32>
    %144 = vector.multi_reduction <add>, %143, %cst_51 [1, 2] : vector<1x8x8xf32> to vector<1xf32>
    %145 = vector.shape_cast %144 : vector<1xf32> to vector<1x1x1xf32>
    %146 = vector.extract %145[0, 0, 0] : f32 from vector<1x1x1xf32>
    %cst_52 = arith.constant -1.250000e-01 : f32
    %147 = arith.mulf %cst_52, %146 : f32
    %148 = arith.addf %142, %147 : f32
    %c0_53 = arith.constant 0 : index
    %c0_54 = arith.constant 0 : index
    %149 = vector.load %arg4[%c0_53, %c0_54] : memref<1x128xf32, #tpu.memory_space<vmem>>, vector<1x128xf32>
    %150 = vector.broadcast %148 : f32 to vector<1x128xf32>
    %151 = arith.addf %149, %150 : vector<1x128xf32>
    %c0_55 = arith.constant 0 : index
    %c0_56 = arith.constant 0 : index
    %152 = vector.load %arg4[%c0_55, %c0_56] : memref<1x128xf32, #tpu.memory_space<vmem>>, vector<1x128xf32>
    tpu.vector_store %arg4[%c0_55, %c0_56], %151 {strides = array<i32>} : memref<1x128xf32, #tpu.memory_space<vmem>>, vector<1x128xf32>,
    return
  }
  func.func @transform_0(%arg0: i32, %arg1: i32) -> (i32, i32) {
    %c0_i32 = arith.constant 0 : i32
    %c0_i32_0 = arith.constant 0 : i32
    %c0_i32_1 = arith.constant 0 : i32
    return %c0_i32, %c0_i32_0 : i32, i32
  }
  func.func @transform_1(%arg0: i32, %arg1: i32) -> (i32, i32) {
    %c0_i32 = arith.constant 0 : i32
    %c0_i32_0 = arith.constant 0 : i32
    %c0_i32_1 = arith.constant 0 : i32
    return %c0_i32, %c0_i32_0 : i32, i32
  }
  func.func @transform_2(%arg0: i32, %arg1: i32) -> (i32, i32) {
    %c0_i32 = arith.constant 0 : i32
    %c0_i32_0 = arith.constant 0 : i32
    return %c0_i32, %arg0 : i32, i32
  }
}

</mosaic_0001>

<bundles_post_ra>
// kernel: tpu_custom_call.1
= control target key start
LH: loop header
LB: loop body
LE: loop exit
PB: predicated region body
PF: predicated region fallthrough
CT: control target
= control target key end

     0   :  { %7 = vsyncpa [#allocation6], 0  ;;  %s1034_s0 = inlined_call_operand.hbm [shape: f32[8,128], index: 0, kind: input, shape index: {}]   ;;  %s1035_s1 = inlined_call_operand.hbm [shape: f32[8,128], index: 1, kind: input, shape index: {}]   ;;  %s1036_s2 = inlined_call_operand.hbm [shape: f32[1,128], index: 2, kind: output, shape index: {}]  }
   0x1   :  { %8 = vsyncpa [#allocation9], 0 }
   0x2   :  { %9 = vsyncpa [#allocation7], 0  ;;  %s954_s9 = smov [#allocation5]   ;;  %s955_s11 = smov [#allocation8]  }
   0x3   :  { %s16_s10 = sshll.u32 %s954_s9, 4  ;;  %s26_s12 = sshll.u32 %s955_s11, 4  ;;  %s17_s10 = int_to_ptr.vmem [resolvable:$true] %s16_s10  ;;  %s27_s12 = int_to_ptr.vmem [resolvable:$true] %s26_s12 }
   0x4   :  { %s882_s15 = scalar_lea.hbm %s1034_s0, 128 }
   0x5   :  { %p883_p0 = scmp.ne.s32.totalorder %s1034_s0, %s882_s15  ;;  %p886_p1 = scmp.lt.u32.totalorder %s882_s15, %s1034_s0 }
   0x7   :  { %p888_p2 = pnand %p886_p1, %p883_p0 }
   0x9   :  { %891 = shalt.err (!%p888_p2)
}
   0xa   :  { %s892_s20 = scalar_lea.vmem %s17_s10, 128  ;;  %p897_p4 = scmp.lt.s32.totalorder %s17_s10, %s17_s10 }
   0xb   :  { %p893_p3 = scmp.ne.s32.totalorder %s17_s10, %s892_s20  ;;  %p898_p5 = scmp.lt.s32.totalorder %s892_s20, %s892_s20 }
   0xd   :  { %p899_p6 = por %p898_p5, %p897_p4 }
   0xf   :  { %p900_p7 = pnand %p899_p6, %p893_p3 }
  0x11   :  { %903 = shalt.err (!%p900_p7)
}
  0x12   :  { %19 = dma.hbm_to_vmem [thread:$0]  %s1034_s0, 128, %s17_s10, [#allocation6]  }
  0x13   :  { %s904_s25 = scalar_lea.hbm %s1035_s1, 128 }
  0x14   :  { %p905_p8 = scmp.ne.s32.totalorder %s1035_s1, %s904_s25  ;;  %p908_p9 = scmp.lt.u32.totalorder %s904_s25, %s1035_s1 }
  0x16   :  { %p910_p10 = pnand %p908_p9, %p905_p8 }
  0x18   :  { %913 = shalt.err (!%p910_p10)
}
  0x19   :  { %s914_s30 = scalar_lea.vmem %s27_s12, 128  ;;  %p919_p12 = scmp.lt.s32.totalorder %s27_s12, %s27_s12 }
  0x1a   :  { %p915_p11 = scmp.ne.s32.totalorder %s27_s12, %s914_s30  ;;  %p920_p13 = scmp.lt.s32.totalorder %s914_s30, %s914_s30 }
  0x1c   :  { %p921_p0 = por %p920_p13, %p919_p12 }
  0x1e   :  { %p922_p1 = pnand %p921_p0, %p915_p11 }
  0x20   :  { %925 = shalt.err (!%p922_p1)
}
  0x21   :  { %29 = dma.hbm_to_vmem [thread:$0]  %s1035_s1, 128, %s27_s12, [#allocation9]  }
  0x22   :  { %948 = dma.done.wait [#allocation6], 128  }
  0x23   :  { %949 = vsyncadd [#allocation6], 4294967168 }
  0x24   :  { %950 = dma.done.wait [#allocation9], 128  }
  0x25   :  { %951 = vsyncadd [#allocation9], 4294967168  ;;  %v956_v0 = vmov 0.0   ;;  %vm957_vm0 = vmmov 0   ;;  %v40_v1 = vld [vmem:[#allocation5] sm:$0xff]  ;;  %v128_v2 = vld [vmem:[#allocation8] sm:$0xff]  ;;  %v123_v6 = vlaneseq }
  0x26   :  { %788 = vmatprep.subr.mxu0 %v956_v0  ;;  %385 = vst [vmem:[#allocation10] sm:$0x1] %v956_v0  ;;  %790 = vmatprep.mubr.msk.f32.mxu0 %vm957_vm0, %v956_v0  ;;  %v41_v3 = vmul.f32 %v40_v1, %v40_v1  ;;  %v129_v4 = vmul.f32 %v128_v2, %v128_v2  ;;  %v958_v5 = vmov 1.0   ;;  %vm200_vm1 = vcmask 64512   ;;  %s960_s10 = smov 0.0   ;;  %s962_s25 = smov [#allocation10]  }
  0x27   :  { %793 = vmatprep.subr.mxu1 %v956_v0  ;;  %795 = vmatprep.mubr.msk.f32.mxu1 %vm957_vm0, %v956_v0  ;;  %v124_v7 = vand.u32 127, %v123_v6  ;;  %vm112_vm3 = vcmask 57344   ;;  %vm359_vm4 = vcmask 1040384   ;;  %v959_v47 = vmov 0   ;;  %s961_s14 = smov 1e-12  }
  0x28   :  { %789 = vmatpush3.xpose.msra.mxu0 %v41_v3  ;;  %794 = vmatpush3.xpose.msra.mxu1 %v129_v4  ;;  %vm383_vm5 = vcmask 0   ;;  %v611_v53 = vshrl.u32 %v123_v6, 7  ;;  %s759_s26 = sshll.u32 %s962_s25, 4  ;;  %s760_s26 = int_to_ptr.vmem [resolvable:$true] %s759_s26 }
  0x29   :  { %798 = vmatprep.subr.mxu0 %v956_v0  ;;  %808 = vmatprep.subr.mxu1 %v956_v0  ;;  %vm125_vm2 = vcmp.lt.s32.totalorder %v124_v7, 4  ;;  %s926_s27 = scalar_lea.vmem %s760_s26, 16  ;;  %s930_s28 = scalar_lea.vmem %s760_s26, 32 }
  0x2a   :  { %848 = vset.pattern.permute.xlu1 %v959_v47  ;;  %849 = vset.pattern.permute.xlu0 %v959_v47  ;;  %vm614_vm6 = vcmp.lt.s32.totalorder %v611_v53, 4  ;;  %p927_p2 = scmp.ne.s32.totalorder %s760_s26, %s926_s27  ;;  %p931_p3 = scmp.lt.s32.totalorder %s760_s26, %s760_s26 }
  0x2b   :  { %791 = vmatmul.mubr.f32.vlgmr.msra.gmra.mrb[0].mxu0 %v958_v5  ;;  %796 = vmatmul.mubr.f32.vlgmr.msra.gmra.mrb[0].mxu1 %v958_v5  ;;  %p932_p4 = scmp.lt.s32.totalorder %s930_s28, %s926_s27 }
  0x2c   :  { %799 = vmatpush3.msra.mxu0 %v128_v2  ;;  %800 = vmatprep.mubr.msk.f32.mxu0 %vm957_vm0, %v956_v0 }
  0x2d   :  { %803 = vmatprep.subr.mxu0 %v956_v0  ;;  %809 = vmatpush3.xpose.msra.mxu1 %v40_v1  ;;  %p933_p5 = por %p932_p4, %p931_p3 }
  0x2e   :  { %810 = vmatprep.mubr.msk.f32.mxu1 %vm957_vm0, %v956_v0  ;;  %813 = vmatprep.subr.mxu1 %v956_v0 }
  0x2f   :  { %801 = vmatmul.mubr.msk.f32.vlgmr.msra.gmra.mrb[2].mxu0 %vm200_vm1, %v958_v5  ;;  %p934_p6 = pnand %p933_p5, %p927_p2 }
  0x30   :  { %804 = vmatpush3.msra.mxu0 %v40_v1  ;;  %805 = vmatprep.mubr.msk.f32.mxu0 %vm957_vm0, %v956_v0 }
  0x31   :  { %818 = vmatprep.subr.mxu0 %v956_v0  ;;  %811 = vmatmul.mubr.f32.vlgmr.msra.gmra.mrb[2].mxu1 %v40_v1 }
  0x32   :  { %814 = vmatpush3.xpose.msra.mxu1 %v128_v2  ;;  %815 = vmatprep.mubr.msk.f32.mxu1 %vm957_vm0, %v956_v0 }
  0x35   :  { %816 = vmatmul.mubr.f32.vlgmr.msra.gmra.mrb[4].mxu1 %v40_v1 }
  0x37   :  { %806 = vmatmul.mubr.msk.f32.vlgmr.msra.gmra.mrb[2].mxu0 %vm200_vm1, %v958_v5 }
  0x38   :  { %819 = vmatpush3.xpose.msra.mxu0 %v128_v2  ;;  %820 = vmatprep.mubr.msk.f32.mxu0 %vm957_vm0, %v956_v0 }
  0x3b   :  { %821 = vmatmul.mubr.f32.vlgmr.msra.gmra.mrb[4].mxu0 %v128_v2 }
  0xfe   :  { %v108_v8 = vpop.f32.mrb[0].mxu0  ;;  %v196_v9 = vpop.f32.mrb[0].mxu1 }
  0xff   :  { %v126_v10 = vsel %vm125_vm2, %v108_v8, 1e+30  ;;  %v792_v11 = vpop.f32.mrb[1].mxu0  ;;  %v113_v12 = vsel %vm112_vm3, %v108_v8, 0.0  ;;  %v284_v13 = vsel %vm125_vm2, %v196_v9, 1e+30 }
 0x100   :  { %127 = vst.msk [vmem:[#allocation2] sm:$0x1] %vm112_vm3, %v126_v10  ;;  %114 = vadd.xlane.f32.xlu0 %v113_v12  ;;  %285 = vst.msk [vmem:[#allocation3] sm:$0x1] %vm112_vm3, %v284_v13  ;;  %v797_v14 = vpop.f32.mrb[1].mxu1  ;;  %v274_v15 = vsel %vm112_vm3, %v196_v9, 0.0 }
 0x104   :  { %275 = vadd.xlane.f32.xlu0 %v274_v15  ;;  %v459_v22 = vpop.f32.mrb[2].mxu1 }
 0x105   :  { %v812_v23 = vpop.f32.mrb[3].mxu1  ;;  %v625_v60 = vmul.f32 2.0, %v459_v22 }
 0x107   :  { %v772_v58 = vld [vmem:[#allocation3] ss:$0 sm:$0xff]  ;;  %v771_v61 = vld [vmem:[#allocation2] ss:$0 sm:$0xff] }
 0x108   :  { %608 = vadd.xlane.f32.xlu0 %v129_v4  ;;  %v1014_v24 = vpop.f32.mrb[4].mxu1 }
 0x109   :  { %v817_v25 = vpop.f32.mrb[5].mxu1  ;;  %v636_v1 = vmul.f32 2.0, %v1014_v24 }
 0x10a   :  { %v352_v16 = vpop.f32.mrb[2].mxu0 }
 0x10b   :  { %v358_v17 = vmul.f32 %v352_v16, %v352_v16  ;;  %v807_v18 = vpop.f32.mrb[3].mxu0 }
 0x10d   :  { %v360_v19 = vsel %vm359_vm4, %v358_v17, 0.0 }
 0x10e   :  { %361 = vadd.xlane.f32.xlu1 %v360_v19  ;;  %v1012_v20 = vpop.f32.mrb[4].mxu0 }
 0x10f   :  { %v822_v21 = vpop.f32.mrb[5].mxu0  ;;  %v640_v59 = vmul.f32 2.0, %v1012_v20 }
 0x112   :  { %605 = vadd.xlane.f32.xlu1 %v41_v3 }
 0x18d   :  { %v115_v26 = vpop.xlane.xlu0 %114 }
 0x18e   :  { %v116_v27 = vrot.slane %v115_v26, 4 }
 0x190   :  { %v117_v28 = vadd.f32 %v116_v27, %v115_v26 }
 0x191   :  { %v276_v29 = vpop.xlane.xlu0 %275 }
 0x192   :  { %v118_v30 = vrot.slane %v117_v28, 2  ;;  %v277_v31 = vrot.slane %v276_v29, 4 }
 0x194   :  { %v278_v32 = vadd.f32 %v277_v31, %v276_v29  ;;  %v119_v33 = vadd.f32 %v118_v30, %v117_v28 }
 0x195   :  { %v609_v54 = vpop.xlane.xlu0 %608 }
 0x196   :  { %v279_v34 = vrot.slane %v278_v32, 2  ;;  %v120_v35 = vrot.slane %v119_v33, 1  ;;  %v616_v56 = vsel %vm614_vm6, %v609_v54, 1e+30 }
 0x197   :  { %v639_v62 = vadd.f32 %v772_v58, %v616_v56 }
 0x198   :  { %v121_v36 = vadd.f32 %v120_v35, %v119_v33  ;;  %v280_v37 = vadd.f32 %v279_v34, %v278_v32 }
 0x199   :  { %v641_v2 = vsub.f32 %v639_v62, %v640_v59 }
 0x19a   :  { %825 = vpush %v121_v36  ;;  %v281_v38 = vrot.slane %v280_v37, 1 }
 0x19b   :  { %v362_v39 = vpop.xlane.xlu1 %361  ;;  %v642_v5 = vmax.f32 %v641_v2, 0.0 }
 0x19c   :  { %v363_v40 = vrot.slane %v362_v39, 4  ;;  %v282_v41 = vadd.f32 %v281_v38, %v280_v37 }
 0x19e   :  { %v364_v42 = vadd.f32 %v363_v40, %v362_v39  ;;  %827 = vpush %v282_v41 }
 0x19f   :  { %v606_v55 = vpop.xlane.xlu1 %605 }
 0x1a0   :  { %v365_v43 = vrot.slane %v364_v42, 2  ;;  %v615_v57 = vsel %vm614_vm6, %v606_v55, 1e+30 }
 0x1a1   :  { %v624_v63 = vadd.f32 %v771_v61, %v615_v57  ;;  %v635_v0 = vadd.f32 %v772_v58, %v615_v57 }
 0x1a2   :  { %v366_v44 = vadd.f32 %v365_v43, %v364_v42 }
 0x1a3   :  { %v626_v3 = vsub.f32 %v624_v63, %v625_v60  ;;  %v637_v4 = vsub.f32 %v635_v0, %v636_v1 }
 0x1a4   :  { %v367_v45 = vrot.slane %v366_v44, 1 }
 0x1a5   :  { %v638_v6 = vmax.f32 %v637_v4, 0.0  ;;  %v627_v7 = vmax.f32 %v626_v3, 0.0 }
 0x1a6   :  { %v368_v46 = vadd.f32 %v367_v45, %v366_v44 }
 0x1a8   :  { %829 = vpush %v368_v46 }
 0x1cb   :  { %s826_s1 = spop %825 }
 0x1cf   :  { %s828_s4 = spop %827 }
 0x1d0   :  { %s356_s5 = sadd.f32 %s828_s4, %s826_s1 }
 0x1d2   :  { %s357_s6 = smul.f32 16.0, %s356_s5 }
 0x1d9   :  { %s830_s7 = spop %829 }
 0x1da   :  { %s370_s8 = smul.f32 2.0, %s830_s7 }
 0x1dc   :  { %s371_s9 = ssub.f32 %s357_s6, %s370_s8 }
 0x1de   :  { %s372_s11 = smax.f32 %s960_s10, %s371_s9 }
 0x1df   :  { %s375_s12 = smul.f32 0.017857144, %s372_s11 }
 0x1e1   :  { %s376_s13 = smul.f32 0.25, %s375_s12 }
 0x1e3   :  { %s377_s15 = smax.f32 %s961_s14, %s376_s13 }
 0x1e4   :  { %v378_v48 = vstv %s377_s15 }
 0x1e5   :  { %850 = vrcp.f32 %v378_v48 }
 0x1ef   :  { %v851_v49 = vpop.eup %850 }
 0x1f0   :  { %831 = vpush %v851_v49 }
 0x221   :  { %s832_s16 = spop %831 }
 0x222   :  { %v381_v50 = vstv %s832_s16 }
 0x223   :  { %v382_v51 = vsub.f32 0.0, %v381_v50 }
 0x225   :  { %384 = vst.msk [vmem:[#allocation4] sm:$0x1] %vm383_vm5, %v382_v51 }
 0x22c   :  { %v773_v52 = vld [vmem:[#allocation4] ss:$0 sm:$0xff] }
 0x22d   :  { %650 = vperm.xlu1 %848, %v773_v52  }
 0x2ac   :  { %v651_v8 = vpop.permute.xlu1 %650 }
 0x2ad   :  { %v653_v9 = vmul.f32 %v651_v8, %v627_v7  ;;  %v654_v10 = vmul.f32 %v651_v8, %v638_v6  ;;  %v655_v11 = vmul.f32 %v651_v8, %v642_v5 }
 0x2af   :  { %v656_v12 = vmul.f32 1.442695, %v653_v9  ;;  %v659_v13 = vmul.f32 1.442695, %v654_v10  ;;  %v662_v14 = vmul.f32 1.442695, %v655_v11 }
 0x2b0   :  { %v665_v15 = vmul.f32 0.5, %v653_v9  ;;  %v666_v16 = vmul.f32 0.5, %v654_v10  ;;  %v667_v17 = vmul.f32 0.5, %v655_v11  ;;  %v677_v18 = vmul.f32 0.25, %v653_v9 }
 0x2b1   :  { %852 = vpow2.f32 %v656_v12  ;;  %v679_v19 = vmul.f32 0.25, %v655_v11  ;;  %v689_v20 = vmul.f32 0.125, %v653_v9  ;;  %v678_v24 = vmul.f32 0.25, %v654_v10 }
 0x2b2   :  { %854 = vpow2.f32 %v659_v13  ;;  %v668_v21 = vmul.f32 1.442695, %v665_v15  ;;  %v671_v22 = vmul.f32 1.442695, %v666_v16  ;;  %v674_v23 = vmul.f32 1.442695, %v667_v17 }
 0x2b3   :  { %856 = vpow2.f32 %v662_v14  ;;  %v680_v25 = vmul.f32 1.442695, %v677_v18  ;;  %v691_v26 = vmul.f32 0.125, %v655_v11  ;;  %v686_v27 = vmul.f32 1.442695, %v679_v19 }
 0x2b4   :  { %858 = vpow2.f32 %v668_v21  ;;  %v701_v28 = vmul.f32 0.0625, %v653_v9  ;;  %v690_v29 = vmul.f32 0.125, %v654_v10  ;;  %v692_v30 = vmul.f32 1.442695, %v689_v20 }
 0x2b5   :  { %860 = vpow2.f32 %v671_v22  ;;  %v683_v31 = vmul.f32 1.442695, %v678_v24  ;;  %v703_v32 = vmul.f32 0.0625, %v655_v11  ;;  %v698_v33 = vmul.f32 1.442695, %v691_v26 }
 0x2b6   :  { %862 = vpow2.f32 %v674_v23  ;;  %v704_v34 = vmul.f32 1.442695, %v701_v28  ;;  %v695_v35 = vmul.f32 1.442695, %v690_v29  ;;  %v702_v37 = vmul.f32 0.0625, %v654_v10 }
 0x2b7   :  { %864 = vpow2.f32 %v680_v25  ;;  %v710_v38 = vmul.f32 1.442695, %v703_v32  ;;  %v749_v26 = vld [vmem:[#allocation10] sm:$0x1] }
 0x2b8   :  { %866 = vpow2.f32 %v686_v27  ;;  %v707_v44 = vmul.f32 1.442695, %v702_v37 }
 0x2b9   :  { %868 = vpow2.f32 %v692_v30 }
 0x2ba   :  { %870 = vpow2.f32 %v683_v31 }
 0x2bb   :  { %v853_v36 = vpop.eup %852  ;;  %872 = vpow2.f32 %v698_v33 }
 0x2bc   :  { %v855_v39 = vpop.eup %854  ;;  %874 = vpow2.f32 %v704_v34 }
 0x2bd   :  { %v857_v40 = vpop.eup %856  ;;  %876 = vpow2.f32 %v695_v35 }
 0x2be   :  { %v859_v41 = vpop.eup %858  ;;  %878 = vpow2.f32 %v710_v38 }
 0x2bf   :  { %v861_v42 = vpop.eup %860  ;;  %v670_v43 = vadd.f32 %v859_v41, %v853_v36  ;;  %880 = vpow2.f32 %v707_v44 }
 0x2c0   :  { %v863_v45 = vpop.eup %862  ;;  %v673_v49 = vadd.f32 %v861_v42, %v855_v39 }
 0x2c1   :  { %v865_v46 = vpop.eup %864  ;;  %v676_v47 = vadd.f32 %v863_v45, %v857_v40 }
 0x2c2   :  { %v682_v48 = vadd.f32 %v865_v46, %v670_v43  ;;  %v867_v50 = vpop.eup %866 }
 0x2c3   :  { %v869_v51 = vpop.eup %868  ;;  %v688_v52 = vadd.f32 %v867_v50, %v676_v47 }
 0x2c4   :  { %v871_v53 = vpop.eup %870  ;;  %v694_v54 = vadd.f32 %v869_v51, %v682_v48 }
 0x2c5   :  { %v873_v55 = vpop.eup %872  ;;  %v685_v56 = vadd.f32 %v871_v53, %v673_v49 }
 0x2c6   :  { %v875_v57 = vpop.eup %874  ;;  %v700_v58 = vadd.f32 %v873_v55, %v688_v52 }
 0x2c7   :  { %v877_v59 = vpop.eup %876  ;;  %v706_v60 = vadd.f32 %v875_v57, %v694_v54 }
 0x2c8   :  { %v879_v61 = vpop.eup %878  ;;  %v697_v0 = vadd.f32 %v877_v59, %v685_v56 }
 0x2c9   :  { %v714_v62 = vsel %vm200_vm1, %v706_v60, 0.0  ;;  %v712_v63 = vadd.f32 %v879_v61, %v700_v58  ;;  %v881_v1 = vpop.eup %880 }
 0x2ca   :  { %715 = vadd.xlane.f32.xlu0 %v714_v62  ;;  %v709_v3 = vadd.f32 %v881_v1, %v697_v0 }
 0x2cb   :  { %v725_v2 = vsel %vm200_vm1, %v712_v63, 0.0 }
 0x2cc   :  { %v737_v4 = vsel %vm200_vm1, %v709_v3, 0.0 }
 0x2ce   :  { %726 = vadd.xlane.f32.xlu0 %v725_v2 }
 0x2d2   :  { %738 = vadd.xlane.f32.xlu0 %v737_v4 }
 0x357   :  { %v716_v5 = vpop.xlane.xlu0 %715 }
 0x358   :  { %v717_v6 = vrot.slane %v716_v5, 4 }
 0x35a   :  { %v718_v7 = vadd.f32 %v717_v6, %v716_v5 }
 0x35b   :  { %v727_v8 = vpop.xlane.xlu0 %726 }
 0x35c   :  { %v719_v9 = vrot.slane %v718_v7, 2  ;;  %v728_v10 = vrot.slane %v727_v8, 4 }
 0x35e   :  { %v729_v11 = vadd.f32 %v728_v10, %v727_v8  ;;  %v720_v12 = vadd.f32 %v719_v9, %v718_v7 }
 0x35f   :  { %v739_v13 = vpop.xlane.xlu0 %738 }
 0x360   :  { %v730_v14 = vrot.slane %v729_v11, 2  ;;  %v740_v15 = vrot.slane %v739_v13, 4  ;;  %v721_v16 = vrot.slane %v720_v12, 1 }
 0x362   :  { %v741_v17 = vadd.f32 %v740_v15, %v739_v13  ;;  %v722_v18 = vadd.f32 %v721_v16, %v720_v12  ;;  %v731_v19 = vadd.f32 %v730_v14, %v729_v11 }
 0x364   :  { %v742_v20 = vrot.slane %v741_v17, 2  ;;  %833 = vpush %v722_v18  ;;  %v732_v21 = vrot.slane %v731_v19, 1 }
 0x366   :  { %v743_v22 = vadd.f32 %v742_v20, %v741_v17  ;;  %v733_v23 = vadd.f32 %v732_v21, %v731_v19 }
 0x368   :  { %835 = vpush %v733_v23  ;;  %v744_v24 = vrot.slane %v743_v22, 1 }
 0x36a   :  { %v745_v25 = vadd.f32 %v744_v24, %v743_v22 }
 0x36c   :  { %837 = vpush %v745_v25 }
 0x395   :  { %s834_s17 = spop %833 }
 0x396   :  { %s724_s20 = smul.f32 0.0625, %s834_s17 }
 0x399   :  { %s836_s18 = spop %835 }
 0x39a   :  { %s735_s19 = smul.f32 0.0625, %s836_s18 }
 0x39c   :  { %s736_s22 = sadd.f32 %s735_s19, %s724_s20 }
 0x39d   :  { %s838_s21 = spop %837 }
 0x39e   :  { %s747_s23 = smul.f32 -0.125, %s838_s21 }
 0x3a0   :  { %s748_s24 = sadd.f32 %s747_s23, %s736_s22 }
 0x3a2   :  { %v750_v27 = vstv %s748_s24 }
 0x3a3   :  { %v751_v28 = vadd.f32 %v750_v27, %v749_v26 }
 0x3a5   :  { %752 = vst [vmem:[#allocation10] sm:$0x1] %v751_v28 }
 0x3a6   :  { %937 = shalt.err (!%p934_p6)
}
 0x3a7   :  { %s938_s0 = scalar_lea.hbm %s1036_s2, 16 }
 0x3a8   :  { %p939_p7 = scmp.ne.s32.totalorder %s1036_s2, %s938_s0  ;;  %p942_p8 = scmp.lt.u32.totalorder %s938_s0, %s1036_s2 }
 0x3aa   :  { %p944_p9 = pnand %p942_p8, %p939_p7 }
 0x3ac   :  { %947 = shalt.err (!%p944_p9)
}
 0x3ad   :  { %762 = dma.vmem_to_hbm [thread:$0]  %s760_s26, 16, %s1036_s2, [#allocation7]  }
 0x3ae   :  { %952 = dma.done.wait [#allocation7], 16  }
 0x3af   :  { %953 = vsyncadd [#allocation7], 4294967280 }
 0x3b0   :  { %766 = vsyncpa [#allocation6], 1 }
 0x3b1   :  { %767 = vsyncpa [#allocation9], 1 }
 0x3b2   :  { %768 = vsyncpa [#allocation7], 1 }

</bundles_post_ra>
